<compile_context>
chip_gen: v7x
topology: tpu7x:2x2x1
jax: 0.10.0
libtpu: 0.0.40
codegen_flags: <defaults>
</compile_context>

<pallas_src>
import functools

import jax
import jax.numpy as jnp
from jax.experimental import pallas as pl
from jax.experimental.pallas import tpu as pltpu

K_HOPS = 3
_MAX_TILE = 512                    # multiple of 128; keeps tiles lane-dense but VMEM-friendly
_VMEM_LIMIT = 32 * 1024 * 1024     # safe on v5e (16 MiB default scoped), v6e, and v7x (64 MiB phys)


def _round_up(x, m):
    return (x + m - 1) // m * m


def _tile_and_pad(dim, max_tile=_MAX_TILE):
    """Pick a 128-aligned tile (<= max_tile) and the padded dim it divides exactly."""
    tile = min(_round_up(dim, 128), max_tile)
    return tile, _round_up(dim, tile)


def _matmul_kernel(a_ref, b_ref, o_ref, acc_ref):
    k = pl.program_id(2)

    @pl.when(k == 0)
    def _():
        acc_ref[...] = jnp.zeros_like(acc_ref)

    acc_ref[...] += jnp.dot(a_ref[...], b_ref[...],
                            preferred_element_type=jnp.float32)

    @pl.when(k == pl.num_programs(2) - 1)
    def _():
        o_ref[...] = acc_ref[...].astype(o_ref.dtype)


def _matmul_bias_kernel(a_ref, b_ref, bias_ref, o_ref, acc_ref):
    k = pl.program_id(2)

    @pl.when(k == 0)
    def _():
        acc_ref[...] = jnp.zeros_like(acc_ref)

    acc_ref[...] += jnp.dot(a_ref[...], b_ref[...],
                            preferred_element_type=jnp.float32)

    @pl.when(k == pl.num_programs(2) - 1)
    def _():
        o_ref[...] = (acc_ref[...] + bias_ref[...]).astype(o_ref.dtype)


def _tiled_matmul(a, b, bias=None, *, tm, tk, tn,
                  out_dtype=jnp.float32, compute_dtype=jnp.bfloat16):
    """C = A @ B (+ bias). A:(M,K), B:(K,N), bias:(1,N). All dims divisible by their tiles."""
    M, K = a.shape
    K2, N = b.shape
    assert K == K2 and M % tm == 0 and K % tk == 0 and N % tn == 0

    a = a.astype(compute_dtype)   # bf16 operands, f32 accumulation on the MXU
    b = b.astype(compute_dtype)

    grid = (M // tm, N // tn, K // tk)
    in_specs = [
        pl.BlockSpec((tm, tk), lambda i, j, k: (i, k)),
        pl.BlockSpec((tk, tn), lambda i, j, k: (k, j)),
    ]
    args = [a, b]
    if bias is not None:
        in_specs.append(pl.BlockSpec((1, tn), lambda i, j, k: (0, j)))
        args.append(bias.astype(jnp.float32))
        kernel = _matmul_bias_kernel
    else:
        kernel = _matmul_kernel

    bytes_accessed = (a.size * a.dtype.itemsize + b.size * b.dtype.itemsize
                      + M * N * jnp.dtype(out_dtype).itemsize)
    return pl.pallas_call(
        kernel,
        out_shape=jax.ShapeDtypeStruct((M, N), out_dtype),
        grid=grid,
        in_specs=in_specs,
        out_specs=pl.BlockSpec((tm, tn), lambda i, j, k: (i, j)),
        scratch_shapes=[pltpu.VMEM((tm, tn), jnp.float32)],
        compiler_params=pltpu.CompilerParams(
            dimension_semantics=("parallel", "parallel", "arbitrary"),
            vmem_limit_bytes=_VMEM_LIMIT,
        ),
        cost_estimate=pl.CostEstimate(
            flops=2 * M * N * K,
            transcendentals=0,
            bytes_accessed=int(bytes_accessed)),
    )(*args)


@functools.partial(jax.jit, static_argnames=("k_hops",))
def sgc_forward_pallas(S, X, W, b, *, k_hops=K_HOPS):
    """H = S^k (X W) + b, evaluated with tiled Pallas matmuls on padded, lane-dense layouts."""
    N, F = X.shape
    O = W.shape[1]

    # N is both a row (sublane) dim and a reduction (lane) dim of S -> one shared tile.
    tN, Np = _tile_and_pad(N)
    tF, Fp = _tile_and_pad(F)
    tO, Op = _tile_and_pad(O)

    Sp = jnp.zeros((Np, Np), jnp.float32).at[:N, :N].set(S)
    Xp = jnp.zeros((Np, Fp), jnp.float32).at[:N, :F].set(X)
    Wp = jnp.zeros((Fp, Op), jnp.float32).at[:F, :O].set(W)
    bp = jnp.zeros((1, Op), jnp.float32).at[:, :O].set(b)

    # 1) Feature projection first (associativity: S^K X W == S^K (X W)), width F -> O.
    H = _tiled_matmul(Xp, Wp, bias=(bp if k_hops == 0 else None),
                      tm=tN, tk=tF, tn=tO)
    # 2) K propagation hops at width O; the bias add is fused into the last hop's finalize.
    for hop in range(k_hops):
        is_last = hop == k_hops - 1
        H = _tiled_matmul(Sp, H, bias=(bp if is_last else None),
                          tm=tN, tk=tN, tn=tO)
    return H[:N, :O]


def build_normalized_adjacency(edge_index, num_nodes):
    """Dense S = D^{-1/2} (A + I) D^{-1/2}, matching PyG gcn_norm(add_self_loops=True).

    edge_index: int32 (2, E), row 0 = source, row 1 = target.  S[dst, src] so that
    propagation is out = S @ X (aggregate at target).
    """
    # TODO(synk): for genuinely sparse graphs (E << N^2) replace the dense S path with a
    # block-sparse / scalar-prefetch gather kernel instead of materializing (N, N).
    src = edge_index[0]
    dst = edge_index[1]
    A = jnp.zeros((num_nodes, num_nodes), jnp.float32)
    A = A.at[dst, src].add(1.0)
    A = A + jnp.eye(num_nodes, dtype=jnp.float32)  # add self loops
    deg = A.sum(axis=1)
    dinv = jnp.where(deg > 0, jax.lax.rsqrt(deg), 0.0)
    S = dinv[:, None] * A * dinv[None, :]
    return S


class PallasSGC:
    """JAX/Pallas equivalent of PyG_SGC_Paper (SGConv, K=3, bias=True)."""

    def __init__(self, input_dim, output_dim, K=K_HOPS, key=None):
        if key is None:
            key = jax.random.PRNGKey(0)
        self.K = K
        # Glorot-uniform weight (as PyG Linear 'glorot'), zero bias.
        limit = (6.0 / (input_dim + output_dim)) ** 0.5
        self.W = jax.random.uniform(
            key, (input_dim, output_dim), jnp.float32, -limit, limit
        )
        self.b = jnp.zeros((1, output_dim), jnp.float32)

    def __call__(self, V, E, X):
        # V: number of nodes (int), E: edge_index (2, E) int32, X: (V, F) float32
        S = build_normalized_adjacency(E, V)
        return sgc_forward_pallas(S, X, self.W, self.b, k_hops=self.K)


if __name__ == "__main__":
    key = jax.random.PRNGKey(0)
    k_x, k_e, k_w = jax.random.split(key, 3)

    num_nodes = 16
    num_edges = 48
    input_dim = 32
    output_dim = 8

    # Deterministic synthetic graph + features.
    X = jax.random.normal(k_x, (num_nodes, input_dim), jnp.float32)
    E = jax.random.randint(k_e, (2, num_edges), 0, num_nodes, jnp.int32)

    model = PallasSGC(input_dim, output_dim, K=K_HOPS, key=k_w)
    H = model(num_nodes, E, X)
    jax.block_until_ready(H)

    # Pure-JAX f32 reference (hop-then-linear order, as in PyG SGConv).
    S = build_normalized_adjacency(E, num_nodes)
    X_ref = X
    for _ in range(K_HOPS):
        X_ref = S @ X_ref
    H_ref = X_ref @ model.W + model.b

    assert H.shape == (num_nodes, output_dim)
    # Kernel runs bf16 operands with f32 accumulation and a reassociated order, so allow
    # ~1e-2-level deviation from the pure-f32 reference.
    max_err = float(jnp.max(jnp.abs(H - H_ref)))
    assert jnp.allclose(H, H_ref, atol=5e-2, rtol=5e-2), f"max abs err {max_err}"

    print("KERNEL_OK")
</pallas_src>

<mosaic_0001>
module attributes {stable_mosaic.version = 11 : i64} {
  func.func @_matmul_bias_kernel(%arg0: i32, %arg1: i32, %arg2: i32, %arg3: memref<128x128xbf16, #tpu.memory_space<vmem>>, %arg4: memref<128x128xbf16, #tpu.memory_space<vmem>>, %arg5: memref<1x128xf32, #tpu.memory_space<vmem>>, %arg6: memref<128x128xf32, #tpu.memory_space<vmem>>, %arg7: memref<128x128xf32, #tpu.memory_space<vmem>>) attributes {dimension_semantics = [#tpu.dimension_semantics<parallel>, #tpu.dimension_semantics<parallel>, #tpu.dimension_semantics<arbitrary>], iteration_bounds = array<i64: 1, 1, 1>, scalar_prefetch = 0 : i64, scratch_operands = 1 : i64, tpu.core_type = #tpu.core_type<tc>, window_params = [{transform_indices = @transform_0, window_bounds = array<i64: 128, 128>}, {transform_indices = @transform_1, window_bounds = array<i64: 128, 128>}, {transform_indices = @transform_2, window_bounds = array<i64: 1, 128>}, {transform_indices = @transform_3, window_bounds = array<i64: 128, 128>}]} {
    %c0_i32 = arith.constant 0 : i32
    %0 = arith.cmpi eq, %arg2, %c0_i32 : i32
    %1 = arith.extui %0 : i1 to i32
    %c0_i32_0 = arith.constant 0 : i32
    %2 = arith.cmpi ne, %1, %c0_i32_0 : i32
    scf.if %2 {
      %cst_10 = arith.constant 0.000000e+00 : f32
      %12 = vector.broadcast %cst_10 : f32 to vector<128x128xf32>
      %c0_11 = arith.constant 0 : index
      %c0_12 = arith.constant 0 : index
      %13 = vector.load %arg7[%c0_11, %c0_12] : memref<128x128xf32, #tpu.memory_space<vmem>>, vector<128x128xf32>
      tpu.vector_store %arg7[%c0_11, %c0_12], %12 {strides = array<i32>} : memref<128x128xf32, #tpu.memory_space<vmem>>, vector<128x128xf32>,
    } else {
    }
    %c0 = arith.constant 0 : index
    %c0_1 = arith.constant 0 : index
    %3 = vector.load %arg7[%c0, %c0_1] : memref<128x128xf32, #tpu.memory_space<vmem>>, vector<128x128xf32>
    %c0_2 = arith.constant 0 : index
    %c0_3 = arith.constant 0 : index
    %4 = vector.load %arg3[%c0_2, %c0_3] : memref<128x128xbf16, #tpu.memory_space<vmem>>, vector<128x128xbf16>
    %c0_4 = arith.constant 0 : index
    %c0_5 = arith.constant 0 : index
    %5 = vector.load %arg4[%c0_4, %c0_5] : memref<128x128xbf16, #tpu.memory_space<vmem>>, vector<128x128xbf16>
    %cst = arith.constant dense<0.000000e+00> : vector<128x128xf32>
    %6 = tpu.matmul %4, %5, %cst {dimension_numbers = #tpu.dot_dimension_numbers<[1], [0], [0], [1], [0, 0, 1, 1], [], []>} : vector<128x128xbf16>, vector<128x128xbf16>, vector<128x128xf32> -> vector<128x128xf32>
    %7 = arith.addf %3, %6 : vector<128x128xf32>
    %c0_6 = arith.constant 0 : index
    %c0_7 = arith.constant 0 : index
    %8 = vector.load %arg7[%c0_6, %c0_7] : memref<128x128xf32, #tpu.memory_space<vmem>>, vector<128x128xf32>
    tpu.vector_store %arg7[%c0_6, %c0_7], %7 {strides = array<i32>} : memref<128x128xf32, #tpu.memory_space<vmem>>, vector<128x128xf32>,
    %c0_i32_8 = arith.constant 0 : i32
    %9 = arith.cmpi eq, %arg2, %c0_i32_8 : i32
    %10 = arith.extui %9 : i1 to i32
    %c0_i32_9 = arith.constant 0 : i32
    %11 = arith.cmpi ne, %10, %c0_i32_9 : i32
    scf.if %11 {
      %c0_10 = arith.constant 0 : index
      %c0_11 = arith.constant 0 : index
      %12 = vector.load %arg7[%c0_10, %c0_11] : memref<128x128xf32, #tpu.memory_space<vmem>>, vector<128x128xf32>
      %c0_12 = arith.constant 0 : index
      %c0_13 = arith.constant 0 : index
      %13 = vector.load %arg5[%c0_12, %c0_13] : memref<1x128xf32, #tpu.memory_space<vmem>>, vector<1x128xf32>
      %14 = vector.broadcast %13 : vector<1x128xf32> to vector<128x128xf32>
      %15 = arith.addf %12, %14 : vector<128x128xf32>
      %c0_14 = arith.constant 0 : index
      %c0_15 = arith.constant 0 : index
      %16 = vector.load %arg6[%c0_14, %c0_15] : memref<128x128xf32, #tpu.memory_space<vmem>>, vector<128x128xf32>
      tpu.vector_store %arg6[%c0_14, %c0_15], %15 {strides = array<i32>} : memref<128x128xf32, #tpu.memory_space<vmem>>, vector<128x128xf32>,
    } else {
    }
    return
  }
  func.func @transform_0(%arg0: i32, %arg1: i32, %arg2: i32) -> (i32, i32) {
    %c0_i32 = arith.constant 0 : i32
    return %arg0, %arg2 : i32, i32
  }
  func.func @transform_1(%arg0: i32, %arg1: i32, %arg2: i32) -> (i32, i32) {
    %c0_i32 = arith.constant 0 : i32
    return %arg2, %arg1 : i32, i32
  }
  func.func @transform_2(%arg0: i32, %arg1: i32, %arg2: i32) -> (i32, i32) {
    %c0_i32 = arith.constant 0 : i32
    %c0_i32_0 = arith.constant 0 : i32
    return %c0_i32, %arg1 : i32, i32
  }
  func.func @transform_3(%arg0: i32, %arg1: i32, %arg2: i32) -> (i32, i32) {
    %c0_i32 = arith.constant 0 : i32
    return %arg0, %arg1 : i32, i32
  }
}

module attributes {stable_mosaic.version = 11 : i64} {
  func.func @_matmul_kernel(%arg0: i32, %arg1: i32, %arg2: i32, %arg3: memref<128x128xbf16, #tpu.memory_space<vmem>>, %arg4: memref<128x128xbf16, #tpu.memory_space<vmem>>, %arg5: memref<128x128xf32, #tpu.memory_space<vmem>>, %arg6: memref<128x128xf32, #tpu.memory_space<vmem>>) attributes {dimension_semantics = [#tpu.dimension_semantics<parallel>, #tpu.dimension_semantics<parallel>, #tpu.dimension_semantics<arbitrary>], iteration_bounds = array<i64: 1, 1, 1>, scalar_prefetch = 0 : i64, scratch_operands = 1 : i64, tpu.core_type = #tpu.core_type<tc>, window_params = [{transform_indices = @transform_0, window_bounds = array<i64: 128, 128>}, {transform_indices = @transform_1, window_bounds = array<i64: 128, 128>}, {transform_indices = @transform_2, window_bounds = array<i64: 128, 128>}]} {
    %c0_i32 = arith.constant 0 : i32
    %0 = arith.cmpi eq, %arg2, %c0_i32 : i32
    %1 = arith.extui %0 : i1 to i32
    %c0_i32_0 = arith.constant 0 : i32
    %2 = arith.cmpi ne, %1, %c0_i32_0 : i32
    scf.if %2 {
      %cst_10 = arith.constant 0.000000e+00 : f32
      %12 = vector.broadcast %cst_10 : f32 to vector<128x128xf32>
      %c0_11 = arith.constant 0 : index
      %c0_12 = arith.constant 0 : index
      %13 = vector.load %arg6[%c0_11, %c0_12] : memref<128x128xf32, #tpu.memory_space<vmem>>, vector<128x128xf32>
      tpu.vector_store %arg6[%c0_11, %c0_12], %12 {strides = array<i32>} : memref<128x128xf32, #tpu.memory_space<vmem>>, vector<128x128xf32>,
    } else {
    }
    %c0 = arith.constant 0 : index
    %c0_1 = arith.constant 0 : index
    %3 = vector.load %arg6[%c0, %c0_1] : memref<128x128xf32, #tpu.memory_space<vmem>>, vector<128x128xf32>
    %c0_2 = arith.constant 0 : index
    %c0_3 = arith.constant 0 : index
    %4 = vector.load %arg3[%c0_2, %c0_3] : memref<128x128xbf16, #tpu.memory_space<vmem>>, vector<128x128xbf16>
    %c0_4 = arith.constant 0 : index
    %c0_5 = arith.constant 0 : index
    %5 = vector.load %arg4[%c0_4, %c0_5] : memref<128x128xbf16, #tpu.memory_space<vmem>>, vector<128x128xbf16>
    %cst = arith.constant dense<0.000000e+00> : vector<128x128xf32>
    %6 = tpu.matmul %4, %5, %cst {dimension_numbers = #tpu.dot_dimension_numbers<[1], [0], [0], [1], [0, 0, 1, 1], [], []>} : vector<128x128xbf16>, vector<128x128xbf16>, vector<128x128xf32> -> vector<128x128xf32>
    %7 = arith.addf %3, %6 : vector<128x128xf32>
    %c0_6 = arith.constant 0 : index
    %c0_7 = arith.constant 0 : index
    %8 = vector.load %arg6[%c0_6, %c0_7] : memref<128x128xf32, #tpu.memory_space<vmem>>, vector<128x128xf32>
    tpu.vector_store %arg6[%c0_6, %c0_7], %7 {strides = array<i32>} : memref<128x128xf32, #tpu.memory_space<vmem>>, vector<128x128xf32>,
    %c0_i32_8 = arith.constant 0 : i32
    %9 = arith.cmpi eq, %arg2, %c0_i32_8 : i32
    %10 = arith.extui %9 : i1 to i32
    %c0_i32_9 = arith.constant 0 : i32
    %11 = arith.cmpi ne, %10, %c0_i32_9 : i32
    scf.if %11 {
      %c0_10 = arith.constant 0 : index
      %c0_11 = arith.constant 0 : index
      %12 = vector.load %arg6[%c0_10, %c0_11] : memref<128x128xf32, #tpu.memory_space<vmem>>, vector<128x128xf32>
      %c0_12 = arith.constant 0 : index
      %c0_13 = arith.constant 0 : index
      %13 = vector.load %arg5[%c0_12, %c0_13] : memref<128x128xf32, #tpu.memory_space<vmem>>, vector<128x128xf32>
      tpu.vector_store %arg5[%c0_12, %c0_13], %12 {strides = array<i32>} : memref<128x128xf32, #tpu.memory_space<vmem>>, vector<128x128xf32>,
    } else {
    }
    return
  }
  func.func @transform_0(%arg0: i32, %arg1: i32, %arg2: i32) -> (i32, i32) {
    %c0_i32 = arith.constant 0 : i32
    return %arg0, %arg2 : i32, i32
  }
  func.func @transform_1(%arg0: i32, %arg1: i32, %arg2: i32) -> (i32, i32) {
    %c0_i32 = arith.constant 0 : i32
    return %arg2, %arg1 : i32, i32
  }
  func.func @transform_2(%arg0: i32, %arg1: i32, %arg2: i32) -> (i32, i32) {
    %c0_i32 = arith.constant 0 : i32
    return %arg0, %arg1 : i32, i32
  }
}

</mosaic_0001>

<bundles_post_ra>
// kernel: sgc_forward_pallas.4
= control target key start
LH: loop header
LB: loop body
LE: loop exit
PB: predicated region body
PF: predicated region fallthrough
CT: control target
= control target key end

     0   :  { %s551_s1 = inlined_call_operand.vmem [shape: bf16[128,128], index: 1, kind: input, shape index: {}]   ;;  %s552_s0 = inlined_call_operand.vmem [shape: bf16[128,128], index: 0, kind: input, shape index: {}]   ;;  %s553_s2 = inlined_call_operand.vmem [shape: f32[128,128], index: 2, kind: output, shape index: {}]  }
   0x1   :  { %v424_v0 = vld [vmem:[%s551_s1] sm:$0xff]   ;;  %v425_v1 = vld [vmem:[%s551_s1 + $0x8] sm:$0xff]   ;;  %v426_v2 = vld [vmem:[%s551_s1 + $0x10] sm:$0xff]  }
   0x2   :  { %376 = vmatprep.subr.bf16.mxu0 %v424_v0  ;;  %408 = vmatprep.subr.bf16.mxu1 %v424_v0  ;;  %v427_v3 = vld [vmem:[%s551_s1 + $0x18] sm:$0xff]   ;;  %v432_v4 = vld [vmem:[%s552_s0] sm:$0xff]   ;;  %v429_v7 = vld [vmem:[%s551_s1 + $0x28] sm:$0xff]  }
   0x3   :  { %377 = vmatpush3.bf16.msra.mxu0 %v424_v0  ;;  %416 = vmatpush3.bf16.msra.mxu1 %v424_v0  ;;  %v433_v5 = vld [vmem:[%s552_s0 + $0x20] sm:$0xff]   ;;  %v430_v8 = vld [vmem:[%s551_s1 + $0x30] sm:$0xff]   ;;  %v431_v9 = vld [vmem:[%s551_s1 + $0x38] sm:$0xff]  }
   0x4   :  { %378 = vmatprep.subr.bf16.mxu0 %v425_v1  ;;  %409 = vmatprep.subr.bf16.mxu1 %v425_v1  ;;  %v428_v6 = vld [vmem:[%s551_s1 + $0x20] sm:$0xff]   ;;  %v434_v10 = vld [vmem:[%s552_s0 + $0x8] sm:$0xff]   ;;  %v436_v12 = vld [vmem:[%s552_s0 + $0x10] sm:$0xff]  }
   0x5   :  { %392 = vmatprep.mubr.bf16.mxu0 %v432_v4  ;;  %400 = vmatprep.mubr.bf16.mxu1 %v433_v5  ;;  %v435_v11 = vld [vmem:[%s552_s0 + $0x28] sm:$0xff]   ;;  %v437_v13 = vld [vmem:[%s552_s0 + $0x30] sm:$0xff]   ;;  %v438_v14 = vld [vmem:[%s552_s0 + $0x18] sm:$0xff]  }
   0x6   :  { %v439_v15 = vld [vmem:[%s552_s0 + $0x38] sm:$0xff]  }
   0x7   :  { %379 = vmatpush3.bf16.msra.mxu0 %v425_v1  ;;  %417 = vmatpush3.bf16.msra.mxu1 %v425_v1 }
   0x8   :  { %380 = vmatprep.subr.bf16.mxu0 %v426_v2  ;;  %410 = vmatprep.subr.bf16.mxu1 %v426_v2 }
   0xb   :  { %381 = vmatpush3.bf16.msra.mxu0 %v426_v2  ;;  %418 = vmatpush3.bf16.msra.mxu1 %v426_v2 }
   0xc   :  { %382 = vmatprep.subr.bf16.mxu0 %v427_v3  ;;  %411 = vmatprep.subr.bf16.mxu1 %v427_v3 }
   0xf   :  { %383 = vmatpush3.bf16.msra.mxu0 %v427_v3  ;;  %419 = vmatpush3.bf16.msra.mxu1 %v427_v3 }
  0x10   :  { %384 = vmatprep.subr.bf16.mxu0 %v428_v6  ;;  %412 = vmatprep.subr.bf16.mxu1 %v428_v6 }
  0x13   :  { %385 = vmatpush3.bf16.msra.mxu0 %v428_v6  ;;  %420 = vmatpush3.bf16.msra.mxu1 %v428_v6 }
  0x14   :  { %386 = vmatprep.subr.bf16.mxu0 %v429_v7  ;;  %413 = vmatprep.subr.bf16.mxu1 %v429_v7 }
  0x17   :  { %387 = vmatpush3.bf16.msra.mxu0 %v429_v7  ;;  %421 = vmatpush3.bf16.msra.mxu1 %v429_v7 }
  0x18   :  { %388 = vmatprep.subr.bf16.mxu0 %v430_v8  ;;  %414 = vmatprep.subr.bf16.mxu1 %v430_v8 }
  0x1b   :  { %389 = vmatpush3.bf16.msra.mxu0 %v430_v8  ;;  %422 = vmatpush3.bf16.msra.mxu1 %v430_v8 }
  0x1c   :  { %390 = vmatprep.subr.bf16.mxu0 %v431_v9  ;;  %415 = vmatprep.subr.bf16.mxu1 %v431_v9 }
  0x1f   :  { %391 = vmatpush3.bf16.msra.mxu0 %v431_v9  ;;  %423 = vmatpush3.bf16.msra.mxu1 %v431_v9 }
  0x22   :  { %393 = vmatmul.mubr.bf16.vlgmr.msra.gmra.mrb[0].mxu0 %v434_v10  ;;  %401 = vmatmul.mubr.bf16.vlgmr.msra.gmra.mrb[0].mxu1 %v435_v11 }
  0x23   :  { %396 = vmatprep.mubr.bf16.mxu0 %v436_v12  ;;  %404 = vmatprep.mubr.bf16.mxu1 %v437_v13 }
  0x2a   :  { %397 = vmatmul.mubr.bf16.gmra.mrb[4].mxu0 %v438_v14  ;;  %405 = vmatmul.mubr.bf16.gmra.mrb[4].mxu1 %v439_v15 }
  0xf5   :  { %v394_v16 = vpop.f32.mrb[0].mxu0  ;;  %v402_v17 = vpop.f32.mrb[0].mxu1 }
  0xf6   :  { %326 = vst [vmem:[%s553_s2 + $0x10] sm:$0xff] %v394_v16  ;;  %334 = vst [vmem:[%s553_s2 + $0x50] sm:$0xff] %v402_v17  ;;  %v210_v18 = vpop.f32.mrb[1].mxu0  ;;  %v242_v19 = vpop.f32.mrb[1].mxu1 }
  0xf7   :  { %324 = vst [vmem:[%s553_s2] sm:$0xff] %v210_v18  ;;  %332 = vst [vmem:[%s553_s2 + $0x40] sm:$0xff] %v242_v19  ;;  %v395_v20 = vpop.f32.mrb[2].mxu0  ;;  %v403_v21 = vpop.f32.mrb[2].mxu1 }
  0xf8   :  { %327 = vst [vmem:[%s553_s2 + $0x18] sm:$0xff] %v395_v20  ;;  %335 = vst [vmem:[%s553_s2 + $0x58] sm:$0xff] %v403_v21  ;;  %v213_v22 = vpop.f32.mrb[3].mxu0  ;;  %v245_v23 = vpop.f32.mrb[3].mxu1 }
  0xf9   :  { %325 = vst [vmem:[%s553_s2 + $0x8] sm:$0xff] %v213_v22  ;;  %333 = vst [vmem:[%s553_s2 + $0x48] sm:$0xff] %v245_v23 }
  0xfd   :  { %v398_v24 = vpop.f32.mrb[4].mxu0  ;;  %v406_v25 = vpop.f32.mrb[4].mxu1 }
  0xfe   :  { %330 = vst [vmem:[%s553_s2 + $0x30] sm:$0xff] %v398_v24  ;;  %338 = vst [vmem:[%s553_s2 + $0x70] sm:$0xff] %v406_v25  ;;  %v226_v26 = vpop.f32.mrb[5].mxu0  ;;  %v258_v27 = vpop.f32.mrb[5].mxu1 }
  0xff   :  { %328 = vst [vmem:[%s553_s2 + $0x20] sm:$0xff] %v226_v26  ;;  %336 = vst [vmem:[%s553_s2 + $0x60] sm:$0xff] %v258_v27  ;;  %v399_v28 = vpop.f32.mrb[6].mxu0  ;;  %v407_v29 = vpop.f32.mrb[6].mxu1 }
 0x100   :  { %331 = vst [vmem:[%s553_s2 + $0x38] sm:$0xff] %v399_v28  ;;  %339 = vst [vmem:[%s553_s2 + $0x78] sm:$0xff] %v407_v29  ;;  %v229_v30 = vpop.f32.mrb[7].mxu0  ;;  %v261_v31 = vpop.f32.mrb[7].mxu1 }
 0x101   :  { %329 = vst [vmem:[%s553_s2 + $0x28] sm:$0xff] %v229_v30  ;;  %337 = vst [vmem:[%s553_s2 + $0x68] sm:$0xff] %v261_v31 }

// kernel: sgc_forward_pallas.7
= control target key start
LH: loop header
LB: loop body
LE: loop exit
PB: predicated region body
PF: predicated region fallthrough
CT: control target
= control target key end

     0   :  { %s586_s1 = inlined_call_operand.vmem [shape: bf16[128,128], index: 1, kind: input, shape index: {}]   ;;  %s587_s0 = inlined_call_operand.vmem [shape: bf16[128,128], index: 0, kind: input, shape index: {}]   ;;  %s588_s2 = inlined_call_operand.vmem [shape: f32[1,128], index: 2, kind: input, shape index: {}]   ;;  %s589_s3 = inlined_call_operand.vmem [shape: f32[128,128], index: 3, kind: output, shape index: {}]  }
   0x1   :  { %v451_v0 = vld [vmem:[%s586_s1] sm:$0xff]   ;;  %v452_v1 = vld [vmem:[%s586_s1 + $0x8] sm:$0xff]   ;;  %v453_v2 = vld [vmem:[%s586_s1 + $0x10] sm:$0xff]  }
   0x2   :  { %403 = vmatprep.subr.bf16.mxu0 %v451_v0  ;;  %435 = vmatprep.subr.bf16.mxu1 %v451_v0  ;;  %v454_v3 = vld [vmem:[%s586_s1 + $0x18] sm:$0xff]   ;;  %v459_v4 = vld [vmem:[%s587_s0] sm:$0xff]   ;;  %v456_v7 = vld [vmem:[%s586_s1 + $0x28] sm:$0xff]  }
   0x3   :  { %404 = vmatpush3.bf16.msra.mxu0 %v451_v0  ;;  %443 = vmatpush3.bf16.msra.mxu1 %v451_v0  ;;  %v460_v5 = vld [vmem:[%s587_s0 + $0x20] sm:$0xff]   ;;  %v457_v8 = vld [vmem:[%s586_s1 + $0x30] sm:$0xff]   ;;  %v458_v9 = vld [vmem:[%s586_s1 + $0x38] sm:$0xff]  }
   0x4   :  { %405 = vmatprep.subr.bf16.mxu0 %v452_v1  ;;  %436 = vmatprep.subr.bf16.mxu1 %v452_v1  ;;  %v455_v6 = vld [vmem:[%s586_s1 + $0x20] sm:$0xff]   ;;  %v461_v10 = vld [vmem:[%s587_s0 + $0x8] sm:$0xff]   ;;  %v463_v12 = vld [vmem:[%s587_s0 + $0x10] sm:$0xff]  }
   0x5   :  { %419 = vmatprep.mubr.bf16.mxu0 %v459_v4  ;;  %427 = vmatprep.mubr.bf16.mxu1 %v460_v5  ;;  %v462_v11 = vld [vmem:[%s587_s0 + $0x28] sm:$0xff]   ;;  %v464_v13 = vld [vmem:[%s587_s0 + $0x30] sm:$0xff]   ;;  %v465_v14 = vld [vmem:[%s587_s0 + $0x18] sm:$0xff]  }
   0x6   :  { %v466_v15 = vld [vmem:[%s587_s0 + $0x38] sm:$0xff]   ;;  %v386_v16 = vld [vmem:[%s588_s2] ss:$0 sm:$0xff] }
   0x7   :  { %406 = vmatpush3.bf16.msra.mxu0 %v452_v1  ;;  %444 = vmatpush3.bf16.msra.mxu1 %v452_v1 }
   0x8   :  { %407 = vmatprep.subr.bf16.mxu0 %v453_v2  ;;  %437 = vmatprep.subr.bf16.mxu1 %v453_v2 }
   0xb   :  { %408 = vmatpush3.bf16.msra.mxu0 %v453_v2  ;;  %445 = vmatpush3.bf16.msra.mxu1 %v453_v2 }
   0xc   :  { %409 = vmatprep.subr.bf16.mxu0 %v454_v3  ;;  %438 = vmatprep.subr.bf16.mxu1 %v454_v3 }
   0xf   :  { %410 = vmatpush3.bf16.msra.mxu0 %v454_v3  ;;  %446 = vmatpush3.bf16.msra.mxu1 %v454_v3 }
  0x10   :  { %411 = vmatprep.subr.bf16.mxu0 %v455_v6  ;;  %439 = vmatprep.subr.bf16.mxu1 %v455_v6 }
  0x13   :  { %412 = vmatpush3.bf16.msra.mxu0 %v455_v6  ;;  %447 = vmatpush3.bf16.msra.mxu1 %v455_v6 }
  0x14   :  { %413 = vmatprep.subr.bf16.mxu0 %v456_v7  ;;  %440 = vmatprep.subr.bf16.mxu1 %v456_v7 }
  0x17   :  { %414 = vmatpush3.bf16.msra.mxu0 %v456_v7  ;;  %448 = vmatpush3.bf16.msra.mxu1 %v456_v7 }
  0x18   :  { %415 = vmatprep.subr.bf16.mxu0 %v457_v8  ;;  %441 = vmatprep.subr.bf16.mxu1 %v457_v8 }
  0x1b   :  { %416 = vmatpush3.bf16.msra.mxu0 %v457_v8  ;;  %449 = vmatpush3.bf16.msra.mxu1 %v457_v8 }
  0x1c   :  { %417 = vmatprep.subr.bf16.mxu0 %v458_v9  ;;  %442 = vmatprep.subr.bf16.mxu1 %v458_v9 }
  0x1f   :  { %418 = vmatpush3.bf16.msra.mxu0 %v458_v9  ;;  %450 = vmatpush3.bf16.msra.mxu1 %v458_v9 }
  0x22   :  { %420 = vmatmul.mubr.bf16.vlgmr.msra.gmra.mrb[0].mxu0 %v461_v10  ;;  %428 = vmatmul.mubr.bf16.vlgmr.msra.gmra.mrb[0].mxu1 %v462_v11 }
  0x23   :  { %423 = vmatprep.mubr.bf16.mxu0 %v463_v12  ;;  %431 = vmatprep.mubr.bf16.mxu1 %v464_v13 }
  0x2a   :  { %424 = vmatmul.mubr.bf16.gmra.mrb[4].mxu0 %v465_v14  ;;  %432 = vmatmul.mubr.bf16.gmra.mrb[4].mxu1 %v466_v15 }
  0xf5   :  { %v421_v17 = vpop.f32.mrb[0].mxu0  ;;  %v429_v18 = vpop.f32.mrb[0].mxu1 }
  0xf6   :  { %v336_v19 = vadd.f32 %v421_v17, %v386_v16  ;;  %v344_v20 = vadd.f32 %v429_v18, %v386_v16  ;;  %v213_v21 = vpop.f32.mrb[1].mxu0  ;;  %v245_v22 = vpop.f32.mrb[1].mxu1 }
  0xf7   :  { %v334_v23 = vadd.f32 %v386_v16, %v213_v21  ;;  %v342_v24 = vadd.f32 %v386_v16, %v245_v22  ;;  %v422_v25 = vpop.f32.mrb[2].mxu0  ;;  %v430_v26 = vpop.f32.mrb[2].mxu1 }
  0xf8   :  { %352 = vst [vmem:[%s589_s3 + $0x10] sm:$0xff] %v336_v19  ;;  %360 = vst [vmem:[%s589_s3 + $0x50] sm:$0xff] %v344_v20  ;;  %v337_v27 = vadd.f32 %v422_v25, %v386_v16  ;;  %v345_v28 = vadd.f32 %v430_v26, %v386_v16  ;;  %v216_v29 = vpop.f32.mrb[3].mxu0  ;;  %v248_v30 = vpop.f32.mrb[3].mxu1 }
  0xf9   :  { %350 = vst [vmem:[%s589_s3] sm:$0xff] %v334_v23  ;;  %358 = vst [vmem:[%s589_s3 + $0x40] sm:$0xff] %v342_v24  ;;  %v335_v31 = vadd.f32 %v386_v16, %v216_v29  ;;  %v343_v32 = vadd.f32 %v386_v16, %v248_v30 }
  0xfa   :  { %353 = vst [vmem:[%s589_s3 + $0x18] sm:$0xff] %v337_v27  ;;  %361 = vst [vmem:[%s589_s3 + $0x58] sm:$0xff] %v345_v28 }
  0xfb   :  { %351 = vst [vmem:[%s589_s3 + $0x8] sm:$0xff] %v335_v31  ;;  %359 = vst [vmem:[%s589_s3 + $0x48] sm:$0xff] %v343_v32 }
  0xfd   :  { %v425_v33 = vpop.f32.mrb[4].mxu0  ;;  %v433_v34 = vpop.f32.mrb[4].mxu1 }
  0xfe   :  { %v340_v35 = vadd.f32 %v425_v33, %v386_v16  ;;  %v348_v36 = vadd.f32 %v433_v34, %v386_v16  ;;  %v229_v37 = vpop.f32.mrb[5].mxu0  ;;  %v261_v38 = vpop.f32.mrb[5].mxu1 }
  0xff   :  { %v338_v39 = vadd.f32 %v386_v16, %v229_v37  ;;  %v346_v40 = vadd.f32 %v386_v16, %v261_v38  ;;  %v426_v41 = vpop.f32.mrb[6].mxu0  ;;  %v434_v42 = vpop.f32.mrb[6].mxu1 }
 0x100   :  { %356 = vst [vmem:[%s589_s3 + $0x30] sm:$0xff] %v340_v35  ;;  %364 = vst [vmem:[%s589_s3 + $0x70] sm:$0xff] %v348_v36  ;;  %v341_v43 = vadd.f32 %v426_v41, %v386_v16  ;;  %v349_v44 = vadd.f32 %v434_v42, %v386_v16  ;;  %v232_v45 = vpop.f32.mrb[7].mxu0  ;;  %v264_v46 = vpop.f32.mrb[7].mxu1 }
 0x101   :  { %354 = vst [vmem:[%s589_s3 + $0x20] sm:$0xff] %v338_v39  ;;  %362 = vst [vmem:[%s589_s3 + $0x60] sm:$0xff] %v346_v40  ;;  %v339_v47 = vadd.f32 %v386_v16, %v232_v45  ;;  %v347_v48 = vadd.f32 %v386_v16, %v264_v46 }
 0x102   :  { %357 = vst [vmem:[%s589_s3 + $0x38] sm:$0xff] %v341_v43  ;;  %365 = vst [vmem:[%s589_s3 + $0x78] sm:$0xff] %v349_v44 }
 0x103   :  { %355 = vst [vmem:[%s589_s3 + $0x28] sm:$0xff] %v339_v47  ;;  %363 = vst [vmem:[%s589_s3 + $0x68] sm:$0xff] %v347_v48 }

</bundles_post_ra>
